<compile_context>
chip_gen: v6e
topology: v6e:2x2x1
jax: 0.10.0
libtpu: 0.0.40
codegen_flags: <defaults>
</compile_context>

<pallas_src>
import itertools

import numpy as np

import jax
import jax.numpy as jnp
from jax import lax
from jax.experimental import pallas as pl
from jax.experimental.pallas import tpu as pltpu


def _rup(x, m):
    return ((x + m - 1) // m) * m


def _pick_tile(M, cap):
    """Tile size for a dimension of extent M.
    Full extent if it fits the cap (no constraint, no padding); otherwise the
    largest multiple-of-8 divisor of M below the cap (no padding); otherwise
    fall back to padding M up to a multiple of the cap."""
    cap = max(8, int(cap))
    if M <= cap:
        return M, M
    hi = (cap // 8) * 8
    lo = max(8, hi // 4)
    for t in range(hi, lo - 1, -8):
        if M % t == 0:
            return t, M
    return hi, _rup(M, hi)


# ----------------------------------------------------------------------------
# Matmul (+bias) kernels: bf16 MXU operands, f32 accumulation, bf16 output.
# ----------------------------------------------------------------------------
def _mm_k1_kernel(a_ref, b_ref, bias_ref, o_ref):
    acc = jnp.dot(a_ref[...], b_ref[...], preferred_element_type=jnp.float32)
    o_ref[...] = (acc + bias_ref[...]).astype(o_ref.dtype)


def _mm_acc_kernel(a_ref, b_ref, bias_ref, o_ref, acc_ref):
    k = pl.program_id(2)
    part = jnp.dot(a_ref[...], b_ref[...], preferred_element_type=jnp.float32)

    @pl.when(k == 0)
    def _():
        acc_ref[...] = part + bias_ref[...]

    @pl.when(k != 0)
    def _():
        acc_ref[...] += part

    @pl.when(k == pl.num_programs(2) - 1)
    def _():
        o_ref[...] = acc_ref[...].astype(o_ref.dtype)


def pallas_matmul_bias(a, b, bias, out_dtype=jnp.bfloat16):
    """(M, K) @ (K, N) + bias."""
    M, K = a.shape
    _, N = b.shape
    a = a.astype(jnp.bfloat16)
    b = b.astype(jnp.bfloat16)

    TN = 128 if N <= 128 else 256
    Np = _rup(N, TN)
    b_p = jnp.pad(b, ((0, 0), (0, Np - N))) if Np != N else b
    bias_p = jnp.pad(bias.astype(jnp.float32).reshape(1, N), ((0, 0), (0, Np - N)))

    if K <= 2048:                       # single reduction step, no K padding
        TK, Kp = K, K
    else:                               # only the largest transposed conv
        TK = 512
        Kp = _rup(K, TK)
    if Kp != K:
        a = jnp.pad(a, ((0, 0), (0, Kp - K)))
        b_p = jnp.pad(b_p, ((0, Kp - K), (0, 0)))

    cap = max(256, min(2048, (1 << 21) // (2 * TK)))   # ~2 MiB bf16 per A tile
    TM, Mp = _pick_tile(M, cap)
    if Mp != M:
        a = jnp.pad(a, ((0, Mp - M), (0, 0)))

    nk = Kp // TK
    if nk == 1:
        out = pl.pallas_call(
            _mm_k1_kernel,
            out_shape=jax.ShapeDtypeStruct((Mp, Np), out_dtype),
            grid=(Mp // TM, Np // TN),
            in_specs=[
                pl.BlockSpec((TM, TK), lambda i, j: (i, 0)),
                pl.BlockSpec((TK, TN), lambda i, j: (0, j)),
                pl.BlockSpec((1, TN), lambda i, j: (0, j)),
            ],
            out_specs=pl.BlockSpec((TM, TN), lambda i, j: (i, j)),
            compiler_params=pltpu.CompilerParams(
                dimension_semantics=("parallel", "parallel")),
        )(a, b_p, bias_p)
    else:
        out = pl.pallas_call(
            _mm_acc_kernel,
            out_shape=jax.ShapeDtypeStruct((Mp, Np), out_dtype),
            grid=(Mp // TM, Np // TN, nk),
            in_specs=[
                pl.BlockSpec((TM, TK), lambda i, j, k: (i, k)),
                pl.BlockSpec((TK, TN), lambda i, j, k: (k, j)),
                pl.BlockSpec((1, TN), lambda i, j, k: (0, j)),
            ],
            out_specs=pl.BlockSpec((TM, TN), lambda i, j, k: (i, j)),
            scratch_shapes=[pltpu.VMEM((TM, TN), jnp.float32)],
            compiler_params=pltpu.CompilerParams(
                dimension_semantics=("parallel", "parallel", "arbitrary")),
        )(a, b_p, bias_p)

    if Mp != M or Np != N:
        out = out[:M, :N]
    return out


# ----------------------------------------------------------------------------
# BatchNorm (training-mode batch stats) + ReLU
# ----------------------------------------------------------------------------
def _affine_relu_kernel(x_ref, s_ref, t_ref, o_ref):
    xf = x_ref[...].astype(jnp.float32)
    o_ref[...] = jnp.maximum(xf * s_ref[...] + t_ref[...], 0.0).astype(o_ref.dtype)


def pallas_bn_relu(x, gamma, beta, eps=1e-5):
    """x: (N, D, H, W, C) bf16/f32 -> bf16."""
    shp = x.shape
    C = shp[-1]
    P = int(np.prod(shp[:-1]))
    # single-pass batch statistics (XLA glue): E[x], E[x^2]
    xf = x.reshape(P, C).astype(jnp.float32)
    m1 = jnp.mean(xf, axis=0)
    m2 = jnp.mean(xf * xf, axis=0)
    var = jnp.maximum(m2 - m1 * m1, 0.0)
    scale = gamma.astype(jnp.float32) / jnp.sqrt(var + eps)
    shift = beta.astype(jnp.float32) - m1 * scale

    # fold r rows into the lane axis so blocks are lane-dense when C is small
    r = 1
    while r * 2 * C <= 512 and P % (r * 2) == 0 and r * 2 <= 128:
        r *= 2
    rows, width = P // r, r * C
    x2 = x.reshape(rows, width)
    s2 = jnp.tile(scale, (r,)).reshape(1, width)
    t2 = jnp.tile(shift, (r,)).reshape(1, width)

    TR, Rp = _pick_tile(rows, max(8, (1 << 21) // (2 * width)))
    if Rp != rows:
        x2 = jnp.pad(x2, ((0, Rp - rows), (0, 0)))
    out = pl.pallas_call(
        _affine_relu_kernel,
        out_shape=jax.ShapeDtypeStruct((Rp, width), jnp.bfloat16),
        grid=(Rp // TR,),
        in_specs=[
            pl.BlockSpec((TR, width), lambda i: (i, 0)),
            pl.BlockSpec((1, width), lambda i: (0, 0)),
            pl.BlockSpec((1, width), lambda i: (0, 0)),
        ],
        out_specs=pl.BlockSpec((TR, width), lambda i: (i, 0)),
        compiler_params=pltpu.CompilerParams(dimension_semantics=("parallel",)),
    )(x2, s2, t2)
    if Rp != rows:
        out = out[:rows]
    return out.reshape(shp)


# ----------------------------------------------------------------------------
# MaxPool3d(kernel=2, stride=2), floor mode; single Pallas pass, no transposes
# ----------------------------------------------------------------------------
def _maxpool_kernel(x_ref, o_ref):
    C = o_ref.shape[-1]
    # reduce the D- and H- pooling pairs (leading dims of the block)
    m = jnp.maximum(
        jnp.maximum(x_ref[0, 0, :, 0, :, :], x_ref[0, 0, :, 1, :, :]),
        jnp.maximum(x_ref[0, 1, :, 0, :, :], x_ref[0, 1, :, 1, :, :]))
    # reduce the W pooling pair (two C-wide halves of the lane axis)
    o_ref[0] = jnp.maximum(m[:, :, :C], m[:, :, C:])


def pallas_maxpool2(x):
    N, D, H, W, C = x.shape
    Do, Ho, Wo = D // 2, H // 2, W // 2
    xe = x[:, :2 * Do, :2 * Ho, :2 * Wo, :]
    xv = xe.reshape(N * Do, 2, Ho, 2, Wo, 2 * C)          # free reshape
    out = pl.pallas_call(
        _maxpool_kernel,
        out_shape=jax.ShapeDtypeStruct((N * Do, Ho, Wo, C), x.dtype),
        grid=(N * Do,),
        in_specs=[pl.BlockSpec((1, 2, Ho, 2, Wo, 2 * C),
                               lambda i: (i, 0, 0, 0, 0, 0))],
        out_specs=pl.BlockSpec((1, Ho, Wo, C), lambda i: (i, 0, 0, 0)),
        compiler_params=pltpu.CompilerParams(dimension_semantics=("parallel",)),
    )(xv)
    return out.reshape(N, Do, Ho, Wo, C)


# ----------------------------------------------------------------------------
# Real per-channel (groups == C) VALID depthwise conv: no patch expansion.
# Grid over (n, od, kd); the kd axis shifts the input depth plane; the 9
# (kh, kw) taps are shifted VMEM slices accumulated into a f32 scratch.
# ----------------------------------------------------------------------------
def pallas_depthwise3(x, w, b):
    """x: (N,D,H,W,C), w: (C,1,KD,KH,KW), b: (C,)."""
    N, D, H, W, C = x.shape
    KD, KH, KW = w.shape[2], w.shape[3], w.shape[4]
    OD, OH, OW = D - KD + 1, H - KH + 1, W - KW + 1
    wt = jnp.asarray(w[:, 0].transpose(1, 2, 3, 0), jnp.float32)   # (KD,KH,KW,C)
    bt = b.astype(jnp.float32).reshape(1, C)

    def kernel(x_ref, w_ref, b_ref, o_ref, acc_ref):
        kd = pl.program_id(2)
        plane = x_ref[0, 0].astype(jnp.float32)                    # (H, W, C)
        s = None
        for kh in range(KH):
            for kw in range(KW):
                term = plane[kh:kh + OH, kw:kw + OW, :] * w_ref[0, kh, kw, :]
                s = term if s is None else s + term

        @pl.when(kd == 0)
        def _():
            acc_ref[...] = s

        @pl.when(kd > 0)
        def _():
            acc_ref[...] += s

        @pl.when(kd == KD - 1)
        def _():
            o_ref[0, 0] = (acc_ref[...] + b_ref[...]).astype(o_ref.dtype)

    out = pl.pallas_call(
        kernel,
        out_shape=jax.ShapeDtypeStruct((N, OD, OH, OW, C), x.dtype),
        grid=(N, OD, KD),
        in_specs=[
            pl.BlockSpec((1, 1, H, W, C), lambda n, od, kd: (n, od + kd, 0, 0, 0)),
            pl.BlockSpec((1, KH, KW, C), lambda n, od, kd: (kd, 0, 0, 0)),
            pl.BlockSpec((1, C), lambda n, od, kd: (0, 0)),
        ],
        out_specs=pl.BlockSpec((1, 1, OH, OW, C), lambda n, od, kd: (n, od, 0, 0, 0)),
        scratch_shapes=[pltpu.VMEM((OH, OW, C), jnp.float32)],
        compiler_params=pltpu.CompilerParams(
            dimension_semantics=("parallel", "parallel", "arbitrary")),
    )(x, wt, bt)
    return out


# ----------------------------------------------------------------------------
# Sigmoid then Softmax over the depth axis (final activation)
# ----------------------------------------------------------------------------
def _sigmoid_softmax_kernel(x_ref, o_ref):
    xf = x_ref[...].astype(jnp.float32)
    s = 1.0 / (1.0 + jnp.exp(-xf))
    m = jnp.max(s, axis=-1, keepdims=True)
    e = jnp.exp(s - m)
    o_ref[...] = e / jnp.sum(e, axis=-1, keepdims=True)


def pallas_sigmoid_softmax_depth(x):
    """x: (N, D, H, W, C) -> (N, C, D, H, W) f32, softmax over depth."""
    N, D, H, W, C = x.shape
    xr = x.transpose(0, 2, 3, 4, 1).reshape(-1, D)
    R = xr.shape[0]
    TR, Rp = _pick_tile(R, max(8, (1 << 21) // (4 * D)))
    if Rp != R:
        xr = jnp.pad(xr, ((0, Rp - R), (0, 0)))
    out = pl.pallas_call(
        _sigmoid_softmax_kernel,
        out_shape=jax.ShapeDtypeStruct((Rp, D), jnp.float32),
        grid=(Rp // TR,),
        in_specs=[pl.BlockSpec((TR, D), lambda i: (i, 0))],
        out_specs=pl.BlockSpec((TR, D), lambda i: (i, 0)),
        compiler_params=pltpu.CompilerParams(dimension_semantics=("parallel",)),
    )(xr)
    if Rp != R:
        out = out[:R]
    return out.reshape(N, H, W, C, D).transpose(0, 3, 4, 1, 2)


# ----------------------------------------------------------------------------
# Convolution glue (slice/stack im2col, polyphase transposed conv) around the
# Pallas matmul kernel.  Activations are channel-last (N, D, H, W, C), bf16.
# ----------------------------------------------------------------------------
def _im2col8(x, KD, KH, KW):
    """Windows in (N, OD, OH, OW, KD, KH, KW, C) order; slice+stack only."""
    N, D, H, W, C = x.shape
    OD, OH, OW = D - KD + 1, H - KH + 1, W - KW + 1
    p = jnp.stack([x[:, i:i + OD] for i in range(KD)], axis=0)
    p = jnp.stack([p[:, :, :, i:i + OH] for i in range(KH)], axis=0)
    p = jnp.stack([p[:, :, :, :, :, i:i + OW] for i in range(KW)], axis=0)
    return p.transpose(3, 4, 5, 6, 2, 1, 0, 7)


def conv3d_valid(x, w, b):
    """VALID 3-D cross-correlation.  x: (N,D,H,W,Cin), w: (Cout,Cin,KD,KH,KW)."""
    N, D, H, W, Cin = x.shape
    Cout, _, KD, KH, KW = w.shape
    OD, OH, OW = D - KD + 1, H - KH + 1, W - KW + 1
    if KD == KH == KW == 1:
        patches = x.reshape(N * D * H * W, Cin)
        wm = w.reshape(Cout, Cin).T
    else:
        p8 = _im2col8(x.astype(jnp.bfloat16), KD, KH, KW)
        patches = p8.reshape(N * OD * OH * OW, KD * KH * KW * Cin)
        wm = w.transpose(2, 3, 4, 1, 0).reshape(KD * KH * KW * Cin, Cout)
    out = pallas_matmul_bias(patches, wm, b)
    return out.reshape(N, OD, OH, OW, Cout)


def conv3d(x, w, b, padding=0):
    if isinstance(padding, int):
        padding = (padding,) * 3
    pd, ph, pw = padding
    if pd or ph or pw:
        x = jnp.pad(x, ((0, 0), (pd, pd), (ph, ph), (pw, pw), (0, 0)))
    return conv3d_valid(x, w, b)


def fused_scale_pointwise(x, dw_w, dw_b, pw_w, pw_b):
    """kernel_size=1 depthwise (exact per-channel affine) folded into the
    following kernel_size=1 pointwise conv -> one channel matmul."""
    Cin = dw_w.shape[0]
    Cout = pw_w.shape[0]
    s = dw_w.reshape(Cin).astype(jnp.float32)
    d = dw_b.reshape(Cin).astype(jnp.float32)
    Wp = pw_w.reshape(Cout, Cin).T.astype(jnp.float32)
    Wf = s[:, None] * Wp
    bf = jnp.dot(d, Wp) + pw_b.astype(jnp.float32)
    N, D, H, W, _ = x.shape
    out = pallas_matmul_bias(x.reshape(-1, Cin), Wf, bf)
    return out.reshape(N, D, H, W, Cout)


def conv_transpose3d(x, w, b, kernel, stride=2, padding=0, output_padding=(0, 0, 0)):
    """PyTorch ConvTranspose3d (stride 2) via polyphase decomposition: one
    dense VALID conv whose weight stacks the 8 phase sub-kernels along the
    output-channel axis, followed by a single reshape/transpose interleave."""
    # TODO(synk): replace the HBM-materialized im2col for this dense conv by an
    # implicit in-VMEM im2col (haloed DMA blocks) to cut the A-stream bytes of
    # the largest transposed conv (kernel 20^3) by another order of magnitude.
    assert stride == 2
    N, D, H, W, Cin = x.shape
    Cout = w.shape[1]
    if isinstance(kernel, int):
        kernel = (kernel,) * 3
    if isinstance(padding, int):
        padding = (padding,) * 3

    dim_info = []
    for size, K, p, op in zip((D, H, W), kernel, padding, output_padding):
        L = (size - 1) * 2 - 2 * p + K + op
        phases = []
        for r in (0, 1):
            s_r = (r + p) % 2
            M_r = (K - s_r + 1) // 2
            c_r = (r + p - s_r) // 2
            L_r = (L - r + 1) // 2
            phases.append((s_r, M_r, c_r, L_r))
        pad_lo = max(M - 1 - c for (_, M, c, _) in phases)
        Mc = pad_lo + max(c for (_, _, c, _) in phases) + 1
        Lmax = max(Lr for (_, _, _, Lr) in phases)
        pad_hi = Lmax + Mc - 1 - size - pad_lo
        assert pad_lo >= 0 and pad_hi >= 0
        kidx, kmsk = [], []
        for (s_r, M_r, c_r, _) in phases:
            idx = np.zeros((Mc,), np.int32)
            msk = np.zeros((Mc,), np.float32)
            for j in range(Mc):
                m = pad_lo + c_r - j
                if 0 <= m < M_r:
                    idx[j] = 2 * m + s_r
                    msk[j] = 1.0
            kidx.append(idx)
            kmsk.append(msk)
        dim_info.append(dict(L=L, phases=phases, pad_lo=pad_lo, pad_hi=pad_hi,
                             Mc=Mc, Lmax=Lmax, kidx=kidx, kmsk=kmsk))
    dD, dH, dW = dim_info

    xw = jnp.pad(x.astype(jnp.bfloat16),
                 ((0, 0), (dD['pad_lo'], dD['pad_hi']),
                  (dH['pad_lo'], dH['pad_hi']),
                  (dW['pad_lo'], dW['pad_hi']), (0, 0)))
    p8 = _im2col8(xw, dD['Mc'], dH['Mc'], dW['Mc'])
    LD, LH, LW = dD['Lmax'], dH['Lmax'], dW['Lmax']
    Prow = N * LD * LH * LW
    Kcols = dD['Mc'] * dH['Mc'] * dW['Mc'] * Cin
    patches = p8.reshape(Prow, Kcols)

    # stacked phase weights: (Kcols, 8*Cout)
    w_phases = []
    for (rd, rh, rw) in itertools.product((0, 1), (0, 1), (0, 1)):
        iD, iH, iW = dD['kidx'][rd], dH['kidx'][rh], dW['kidx'][rw]
        mask = (dD['kmsk'][rd][:, None, None] *
                dH['kmsk'][rh][None, :, None] *
                dW['kmsk'][rw][None, None, :])
        wp = w[:, :, iD[:, None, None], iH[None, :, None], iW[None, None, :]]
        wp = wp * jnp.asarray(mask)[None, None]
        wp = wp.transpose(2, 3, 4, 0, 1).reshape(Kcols, Cout)
        w_phases.append(wp)
    W_big = jnp.concatenate(w_phases, axis=1)
    b_big = jnp.tile(b, 8)

    big = pallas_matmul_bias(patches, W_big, b_big)        # (Prow, 8*Cout) bf16
    big = big.reshape(N, LD, LH, LW, 2, 2, 2, Cout)
    out = big.transpose(0, 1, 4, 2, 5, 3, 6, 7).reshape(N, 2 * LD, 2 * LH, 2 * LW, Cout)
    return out[:, :dD['L'], :dH['L'], :dW['L'], :]


# ----------------------------------------------------------------------------
# Parameter init + module forwards (mirrors the PyTorch module structure)
# ----------------------------------------------------------------------------
def _nrm(key, shape, scale=0.1):
    return scale * jax.random.normal(key, shape, jnp.float32)


def init_convblock(key, cin, cout):
    ks = jax.random.split(key, 4)
    return {
        "w1": _nrm(ks[0], (cout, cin, 3, 3, 3)), "b1": _nrm(ks[1], (cout,), 0.05),
        "g1": jnp.ones((cout,), jnp.float32), "be1": jnp.zeros((cout,), jnp.float32),
        "w2": _nrm(ks[2], (cout, cout, 3, 3, 3)), "b2": _nrm(ks[3], (cout,), 0.05),
        "g2": jnp.ones((cout,), jnp.float32), "be2": jnp.zeros((cout,), jnp.float32),
    }


def convblock_forward(p, x):
    x = conv3d(x, p["w1"], p["b1"], padding=1)
    x = pallas_bn_relu(x, p["g1"], p["be1"])
    x = conv3d(x, p["w2"], p["b2"], padding=1)
    x = pallas_bn_relu(x, p["g2"], p["be2"])
    return x


def init_ds(key, cin, cout, k):
    ks = jax.random.split(key, 8)
    return {
        "dw1_w": _nrm(ks[0], (cin, 1, k, k, k)), "dw1_b": _nrm(ks[1], (cin,), 0.05),
        "pw1_w": _nrm(ks[2], (cout, cin, k, k, k)), "pw1_b": _nrm(ks[3], (cout,), 0.05),
        "bn_g": jnp.ones((cout,), jnp.float32), "bn_b": jnp.zeros((cout,), jnp.float32),
        "dw2_w": _nrm(ks[4], (cout, 1, k, k, k)), "dw2_b": _nrm(ks[5], (cout,), 0.05),
        "pw2_w": _nrm(ks[6], (cout, cout, k, k, k)), "pw2_b": _nrm(ks[7], (cout,), 0.05),
    }


def ds_forward(p, x):
    # Same (gamma, beta) used for both BN applications with freshly recomputed
    # batch stats (training-mode, matches the PyTorch module reusing one BN).
    ksize = p["dw1_w"].shape[2]
    if ksize == 1:
        x = fused_scale_pointwise(x, p["dw1_w"], p["dw1_b"], p["pw1_w"], p["pw1_b"])
    else:
        x = pallas_depthwise3(x, p["dw1_w"], p["dw1_b"])
        x = conv3d_valid(x, p["pw1_w"], p["pw1_b"])
    x = pallas_bn_relu(x, p["bn_g"], p["bn_b"])
    if ksize == 1:
        x = fused_scale_pointwise(x, p["dw2_w"], p["dw2_b"], p["pw2_w"], p["pw2_b"])
    else:
        x = pallas_depthwise3(x, p["dw2_w"], p["dw2_b"])
        x = conv3d_valid(x, p["pw2_w"], p["pw2_b"])
    x = pallas_bn_relu(x, p["bn_g"], p["bn_b"])
    return x


def init_uenc(key, k, ch_mul=32, in_chans=1):
    ks = jax.random.split(key, 19)
    cm = ch_mul
    return {
        "enc1": init_convblock(ks[0], in_chans, cm),
        "enc2": init_ds(ks[1], cm, 2 * cm, 3),
        "enc3": init_ds(ks[2], 2 * cm, 4 * cm, 1),
        "enc4": init_ds(ks[3], 4 * cm, 8 * cm, 1),
        "middle": init_ds(ks[4], 8 * cm, 16 * cm, 1),
        "dec1": init_ds(ks[5], 16 * cm, 8 * cm, 1),
        "dec2": init_ds(ks[6], 8 * cm, 4 * cm, 1),
        "dec3": init_ds(ks[7], 4 * cm, 2 * cm, 1),
        "dec4": init_convblock(ks[8], 2 * cm, cm),
        "up1_w": _nrm(ks[9], (16 * cm, 8 * cm, 4, 4, 5)), "up1_b": _nrm(ks[10], (8 * cm,), 0.05),
        "up2_w": _nrm(ks[11], (8 * cm, 4 * cm, 4, 4, 4)), "up2_b": _nrm(ks[12], (4 * cm,), 0.05),
        "up3_w": _nrm(ks[13], (4 * cm, 2 * cm, 6, 7, 6)), "up3_b": _nrm(ks[14], (2 * cm,), 0.05),
        "up4_w": _nrm(ks[15], (2 * cm, cm, 20, 20, 20)), "up4_b": _nrm(ks[16], (cm,), 0.05),
        "final_w": _nrm(ks[17], (k, cm, 3, 3, 3)), "final_b": _nrm(ks[18], (k,), 0.05),
    }


def uenc_forward(params, x_ncdhw):
    x = x_ncdhw.transpose(0, 2, 3, 4, 1).astype(jnp.bfloat16)   # channel-last bf16
    conv1 = convblock_forward(params["enc1"], x)
    conv2 = ds_forward(params["enc2"], pallas_maxpool2(conv1))
    conv3 = ds_forward(params["enc3"], pallas_maxpool2(conv2))
    conv4 = ds_forward(params["enc4"], pallas_maxpool2(conv3))
    conv5 = ds_forward(params["middle"], pallas_maxpool2(conv4))

    up1 = conv_transpose3d(conv5, params["up1_w"], params["up1_b"], (4, 4, 5), 2, 1, (0, 0, 0))
    conv6 = ds_forward(params["dec1"], jnp.concatenate([up1, conv4], axis=-1))
    up2 = conv_transpose3d(conv6, params["up2_w"], params["up2_b"], (4, 4, 4), 2, 1, (0, 1, 0))
    conv7 = ds_forward(params["dec2"], jnp.concatenate([up2, conv3], axis=-1))
    up3 = conv_transpose3d(conv7, params["up3_w"], params["up3_b"], (6, 7, 6), 2, 2, (0, 0, 0))
    conv8 = ds_forward(params["dec3"], jnp.concatenate([up3, conv2], axis=-1))
    up4 = conv_transpose3d(conv8, params["up4_w"], params["up4_b"], (20, 20, 20), 2, 1, (0, 1, 0))
    conv9 = convblock_forward(params["dec4"], jnp.concatenate([up4, conv1], axis=-1))

    logits = conv3d(conv9, params["final_w"], params["final_b"], padding=1)
    return pallas_sigmoid_softmax_depth(logits)                  # NCDHW, f32


# ----------------------------------------------------------------------------
# Small numpy references used only for in-script sanity checks
# ----------------------------------------------------------------------------
def _np_conv_transpose3d(x, w, b, kernel, stride, padding, output_padding):
    N, Cin, D, H, W = x.shape
    Cout = w.shape[1]
    KD, KH, KW = kernel
    pd, ph, pw = padding
    opd, oph, opw = output_padding
    LD = (D - 1) * stride - 2 * pd + KD + opd
    LH = (H - 1) * stride - 2 * ph + KH + oph
    LW = (W - 1) * stride - 2 * pw + KW + opw
    out = np.zeros((N, Cout, LD, LH, LW), np.float32) + b.reshape(1, Cout, 1, 1, 1)
    for d in range(D):
        for h in range(H):
            for w_ in range(W):
                contrib = np.einsum('ni,io...->no...', x[:, :, d, h, w_], w)
                for kd in range(KD):
                    yd = d * stride - pd + kd
                    if yd < 0 or yd >= LD:
                        continue
                    for kh in range(KH):
                        yh = h * stride - ph + kh
                        if yh < 0 or yh >= LH:
                            continue
                        for kw in range(KW):
                            yw = w_ * stride - pw + kw
                            if yw < 0 or yw >= LW:
                                continue
                            out[:, :, yd, yh, yw] += contrib[:, :, kd, kh, kw]
    return out


def _np_depthwise3(x, w, b):
    N, C, D, H, W = x.shape
    OD, OH, OW = D - 2, H - 2, W - 2
    out = np.zeros((N, C, OD, OH, OW), np.float32) + b.reshape(1, C, 1, 1, 1)
    for kd in range(3):
        for kh in range(3):
            for kw in range(3):
                out += x[:, :, kd:kd + OD, kh:kh + OH, kw:kw + OW] * \
                       w[:, 0, kd, kh, kw].reshape(1, C, 1, 1, 1)
    return out


# ----------------------------------------------------------------------------
if __name__ == "__main__":
    key = jax.random.PRNGKey(0)
    k_classes, ch_mul, in_chans = 2, 4, 1
    pkey, xkey, c1, c2, c3, c4, c5 = jax.random.split(key, 7)
    params = init_uenc(pkey, k_classes, ch_mul, in_chans)

    # Smallest spatial size admitted by this architecture's shape arithmetic:
    # (D, H, W) = (32, 39, 40) so that all skip-connection concats line up.
    x = jax.random.normal(xkey, (1, in_chans, 32, 39, 40), jnp.float32)

    # --- sanity: VALID conv (Pallas bf16 matmul path) vs XLA reference ---
    xs = jax.random.normal(c1, (1, 6, 7, 8, 3), jnp.float32)
    ws = 0.1 * jax.random.normal(c2, (5, 3, 3, 3, 3), jnp.float32)
    bs = 0.1 * jax.random.normal(c3, (5,), jnp.float32)
    ref = lax.conv_general_dilated(
        xs, ws, (1, 1, 1), "VALID",
        dimension_numbers=("NDHWC", "OIDHW", "NDHWC")) + bs
    got = conv3d_valid(xs, ws, bs).astype(jnp.float32)
    rel = jnp.max(jnp.abs(got - ref)) / (jnp.max(jnp.abs(ref)) + 1e-6)
    assert float(rel) < 3e-2, f"conv sanity check failed, rel err {rel}"

    # --- sanity: polyphase ConvTranspose3d vs numpy reference ---
    xt = jax.random.normal(c4, (1, 2, 2, 3, 3), jnp.float32)              # NCDHW
    wt = 0.1 * jax.random.normal(c5, (2, 3, 4, 4, 5), jnp.float32)         # (Cin,Cout,kD,kH,kW)
    bt = 0.1 * jnp.arange(3, dtype=jnp.float32)
    ref_t = _np_conv_transpose3d(np.asarray(xt), np.asarray(wt), np.asarray(bt),
                                 (4, 4, 5), 2, (1, 1, 1), (0, 1, 0))
    got_t = conv_transpose3d(xt.transpose(0, 2, 3, 4, 1), wt, bt,
                             (4, 4, 5), 2, 1, (0, 1, 0)).transpose(0, 4, 1, 2, 3)
    got_t = np.asarray(got_t, np.float32)
    rel_t = np.max(np.abs(got_t - ref_t)) / (np.max(np.abs(ref_t)) + 1e-6)
    assert float(rel_t) < 3e-2, f"conv_transpose sanity check failed, rel err {rel_t}"

    # --- sanity: depthwise conv (shifted-plane Pallas kernel) vs numpy ---
    xd = jax.random.normal(c1, (1, 4, 6, 7, 8), jnp.float32)               # NCDHW, C=4
    wd = 0.1 * jax.random.normal(c2, (4, 1, 3, 3, 3), jnp.float32)
    bd = 0.1 * jax.random.normal(c3, (4,), jnp.float32)
    ref_d = _np_depthwise3(np.asarray(xd), np.asarray(wd), np.asarray(bd))
    got_d = pallas_depthwise3(xd.transpose(0, 2, 3, 4, 1), wd, bd).transpose(0, 4, 1, 2, 3)
    rel_d = np.max(np.abs(np.asarray(got_d, np.float32) - ref_d)) / (np.max(np.abs(ref_d)) + 1e-6)
    assert float(rel_d) < 1e-3, f"depthwise sanity check failed, rel err {rel_d}"

    fwd = jax.jit(uenc_forward)
    out = jax.block_until_ready(fwd(params, x))

    assert out.shape == (1, k_classes, 32, 39, 40), out.shape
    assert bool(jnp.all(jnp.isfinite(out)))
    # softmax over dim=2 (depth) sums to ~1
    assert bool(jnp.max(jnp.abs(jnp.sum(out, axis=2) - 1.0)) < 5e-3)
    print("KERNEL_OK")
</pallas_src>

<mosaic_0001>
module attributes {stable_mosaic.version = 11 : i64} {
  func.func @_mm_k1_kernel(%arg0: i32, %arg1: i32, %arg2: memref<120x81xbf16, #tpu.memory_space<vmem>>, %arg3: memref<81x128xbf16, #tpu.memory_space<vmem>>, %arg4: memref<1x128xf32, #tpu.memory_space<vmem>>, %arg5: memref<120x128xbf16, #tpu.memory_space<vmem>>) attributes {dimension_semantics = [#tpu.dimension_semantics<parallel>, #tpu.dimension_semantics<parallel>], iteration_bounds = array<i64: 1, 1>, scalar_prefetch = 0 : i64, scratch_operands = 0 : i64, tpu.core_type = #tpu.core_type<tc>, window_params = [{transform_indices = @transform_0, window_bounds = array<i64: 120, 81>}, {transform_indices = @transform_1, window_bounds = array<i64: 81, 128>}, {transform_indices = @transform_2, window_bounds = array<i64: 1, 128>}, {transform_indices = @transform_3, window_bounds = array<i64: 120, 128>}]} {
    %c0 = arith.constant 0 : index
    %c0_0 = arith.constant 0 : index
    %0 = vector.load %arg2[%c0, %c0_0] : memref<120x81xbf16, #tpu.memory_space<vmem>>, vector<120x81xbf16>
    %c0_1 = arith.constant 0 : index
    %c0_2 = arith.constant 0 : index
    %1 = vector.load %arg3[%c0_1, %c0_2] : memref<81x128xbf16, #tpu.memory_space<vmem>>, vector<81x128xbf16>
    %cst = arith.constant dense<0.000000e+00> : vector<120x128xf32>
    %2 = tpu.matmul %0, %1, %cst {dimension_numbers = #tpu.dot_dimension_numbers<[1], [0], [0], [1], [0, 0, 1, 1], [], []>} : vector<120x81xbf16>, vector<81x128xbf16>, vector<120x128xf32> -> vector<120x128xf32>
    %c0_3 = arith.constant 0 : index
    %c0_4 = arith.constant 0 : index
    %3 = vector.load %arg4[%c0_3, %c0_4] : memref<1x128xf32, #tpu.memory_space<vmem>>, vector<1x128xf32>
    %4 = vector.broadcast %3 : vector<1x128xf32> to vector<120x128xf32>
    %5 = arith.addf %2, %4 : vector<120x128xf32>
    %6 = arith.truncf %5 : vector<120x128xf32> to vector<120x128xbf16>
    %c0_5 = arith.constant 0 : index
    %c0_6 = arith.constant 0 : index
    %7 = vector.load %arg5[%c0_5, %c0_6] : memref<120x128xbf16, #tpu.memory_space<vmem>>, vector<120x128xbf16>
    tpu.vector_store %arg5[%c0_5, %c0_6], %6 {strides = array<i32>} : memref<120x128xbf16, #tpu.memory_space<vmem>>, vector<120x128xbf16>,
    return
  }
  func.func @transform_0(%arg0: i32, %arg1: i32) -> (i32, i32) {
    %c0_i32 = arith.constant 0 : i32
    %c0_i32_0 = arith.constant 0 : i32
    return %arg0, %c0_i32 : i32, i32
  }
  func.func @transform_1(%arg0: i32, %arg1: i32) -> (i32, i32) {
    %c0_i32 = arith.constant 0 : i32
    %c0_i32_0 = arith.constant 0 : i32
    return %c0_i32, %arg1 : i32, i32
  }
  func.func @transform_2(%arg0: i32, %arg1: i32) -> (i32, i32) {
    %c0_i32 = arith.constant 0 : i32
    %c0_i32_0 = arith.constant 0 : i32
    return %c0_i32, %arg1 : i32, i32
  }
  func.func @transform_3(%arg0: i32, %arg1: i32) -> (i32, i32) {
    %c0_i32 = arith.constant 0 : i32
    return %arg0, %arg1 : i32, i32
  }
}

</mosaic_0001>

<bundles_post_ra>
// kernel: tpu_custom_call.1
= control target key start
LH: loop header
LB: loop body
LE: loop exit
PB: predicated region body
PF: predicated region fallthrough
CT: control target
= control target key end

     0   :  { %vm145_vm0 = vcmask 1040384   ;;  %v527_v1 = vmov 0   ;;  %vm120_vm1 = vcmask 662528   ;;  %s607_s0 = inlined_call_operand.vmem [shape: bf16[120,81], index: 0, kind: input, shape index: {}]   ;;  %s608_s1 = inlined_call_operand.vmem [shape: bf16[81,128], index: 1, kind: input, shape index: {}]   ;;  %s609_s2 = inlined_call_operand.vmem [shape: f32[1,128], index: 2, kind: input, shape index: {}]   ;;  %s610_s3 = inlined_call_operand.hbm [shape: bf16[120,128], index: 3, kind: output, shape index: {}]  }
   0x1   :  { %v491_v0 = vld [vmem:[%s608_s1 + $0x28] ss:$0 sps:$4 sm:$0x11]   ;;  %v147_v2 = vsel %vm145_vm0, 65535, %v527_v1  ;;  %v492_v4 = vld [vmem:[%s608_s1 + $0x20] sm:$0xff]   ;;  %v493_v5 = vld [vmem:[%s608_s1 + $0x18] sm:$0xff]  }
   0x2   :  { %v149_v3 = vand.u32 %v491_v0, %v147_v2  ;;  %v497_v6 = vld [vmem:[%s607_s0] sm:$0xff]   ;;  %v494_v8 = vld [vmem:[%s608_s1 + $0x10] sm:$0xff]  }
   0x3   :  { %v498_v7 = vld [vmem:[%s607_s0 + $0x20] sm:$0xff]   ;;  %459 = vmatprep.mubr.msk.bf16.mxu0 %vm120_vm1, %v497_v6 }
   0x4   :  { %447 = vmatprep.subr.bf16.mxu0 %v149_v3  ;;  %475 = vmatprep.subr.bf16.mxu1 %v149_v3 }
   0x5   :  { %448 = vmatpush3.bf16.msra.mxu0 %v149_v3  ;;  %481 = vmatpush3.bf16.msra.mxu1 %v149_v3 }
   0x6   :  { %449 = vmatprep.subr.bf16.mxu0 %v492_v4  ;;  %476 = vmatprep.subr.bf16.mxu1 %v492_v4 }
   0x7   :  { %467 = vmatprep.mubr.msk.bf16.mxu1 %vm120_vm1, %v498_v7 }
   0x9   :  { %450 = vmatpush3.bf16.msra.mxu0 %v492_v4  ;;  %482 = vmatpush3.bf16.msra.mxu1 %v492_v4 }
   0xa   :  { %451 = vmatprep.subr.bf16.mxu0 %v493_v5  ;;  %477 = vmatprep.subr.bf16.mxu1 %v493_v5 }
   0xb   :  { %8 = vsyncpa [#allocation3], 0  ;;  %v495_v9 = vld [vmem:[%s608_s1 + $0x8] sm:$0xff]   ;;  %v496_v10 = vld [vmem:[%s608_s1] sm:$0xff]  }
   0xc   :  { %v499_v11 = vld [vmem:[%s607_s0 + $0x8] sm:$0xff]   ;;  %v501_v13 = vld [vmem:[%s607_s0 + $0x10] sm:$0xff]   ;;  %v503_v15 = vld [vmem:[%s607_s0 + $0x18] sm:$0xff]  }
   0xd   :  { %452 = vmatpush3.bf16.msra.mxu0 %v493_v5  ;;  %483 = vmatpush3.bf16.msra.mxu1 %v493_v5  ;;  %v500_v12 = vld [vmem:[%s607_s0 + $0x28] sm:$0xff]   ;;  %v502_v14 = vld [vmem:[%s607_s0 + $0x30] sm:$0xff]   ;;  %v504_v16 = vld [vmem:[%s607_s0 + $0x38] ss:$0 sps:$4 sm:$0xff]   ;;  %s528_s0 = smov [#allocation2]  }
   0xe   :  { %453 = vmatprep.subr.bf16.mxu0 %v494_v8  ;;  %478 = vmatprep.subr.bf16.mxu1 %v494_v8  ;;  %v339_v19 = vld [vmem:[%s609_s2] ss:$0 sm:$0xff]  ;;  %s328_s2 = sshll.u32 %s528_s0, 4  ;;  %s329_s2 = int_to_ptr.vmem [resolvable:$true] %s328_s2 }
   0xf   :  { %s505_s14 = scalar_lea.vmem %s329_s2, 960  ;;  %p510_p1 = scmp.lt.s32.totalorder %s329_s2, %s329_s2 }
  0x10   :  { %p506_p0 = scmp.ne.s32.totalorder %s329_s2, %s505_s14  ;;  %p511_p2 = scmp.lt.s32.totalorder %s505_s14, %s505_s14 }
  0x11   :  { %454 = vmatpush3.bf16.msra.mxu0 %v494_v8  ;;  %484 = vmatpush3.bf16.msra.mxu1 %v494_v8 }
  0x12   :  { %455 = vmatprep.subr.bf16.mxu0 %v495_v9  ;;  %479 = vmatprep.subr.bf16.mxu1 %v495_v9  ;;  %p512_p3 = por %p511_p2, %p510_p1 }
  0x14   :  { %p513_p4 = pnand %p512_p3, %p506_p0 }
  0x15   :  { %456 = vmatpush3.bf16.msra.mxu0 %v495_v9  ;;  %485 = vmatpush3.bf16.msra.mxu1 %v495_v9 }
  0x16   :  { %457 = vmatprep.subr.bf16.mxu0 %v496_v10  ;;  %480 = vmatprep.subr.bf16.mxu1 %v496_v10 }
  0x19   :  { %458 = vmatpush3.bf16.msra.mxu0 %v496_v10  ;;  %486 = vmatpush3.bf16.msra.mxu1 %v496_v10 }
  0x1c   :  { %460 = vmatmul.mubr.msk.bf16.vlgmr.msra.gmra.mxu0 %vm120_vm1, %v499_v11  ;;  %468 = vmatmul.mubr.msk.bf16.vlgmr.msra.gmra.mxu1 %vm120_vm1, %v500_v12 }
  0x1d   :  { %463 = vmatprep.mubr.msk.bf16.mxu0 %vm120_vm1, %v501_v13  ;;  %471 = vmatprep.mubr.msk.bf16.mxu1 %vm120_vm1, %v502_v14 }
  0x24   :  { %464 = vmatmul.mubr.msk.bf16.gmra.mxu0 %vm120_vm1, %v503_v15  ;;  %472 = vmatmul.mubr.msk.bf16.gmra.mxu1 %vm120_vm1, %v504_v16 }
  0xdc   :  { %v461_v17 = vpop.f32.mrf.mxu0  ;;  %v469_v18 = vpop.f32.mrf.mxu1 }
  0xdd   :  { %v194_v24 = vadd.f32 %v461_v17, %v339_v19  ;;  %v226_v25 = vadd.f32 %v469_v18, %v339_v19 }
  0xde   :  { %v185_v20 = vpop.f32.mrf.mxu0  ;;  %v217_v21 = vpop.f32.mrf.mxu1 }
  0xdf   :  { %v186_v28 = vadd.f32 %v339_v19, %v185_v20  ;;  %v218_v29 = vadd.f32 %v339_v19, %v217_v21 }
  0xe0   :  { %v462_v22 = vpop.f32.mrf.mxu0  ;;  %v470_v23 = vpop.f32.mrf.mxu1 }
  0xe1   :  { %v197_v26 = vadd.f32 %v462_v22, %v339_v19  ;;  %v229_v27 = vadd.f32 %v470_v23, %v339_v19 }
  0xe2   :  { %v188_v30 = vpop.f32.mrf.mxu0  ;;  %v220_v31 = vpop.f32.mrf.mxu1 }
  0xe3   :  { %v400_v32 = vpack.c.bf16 %v197_v26, %v194_v24  ;;  %v420_v33 = vpack.c.bf16 %v229_v27, %v226_v25  ;;  %v189_v34 = vadd.f32 %v339_v19, %v188_v30  ;;  %v221_v35 = vadd.f32 %v339_v19, %v220_v31 }
  0xe4   :  { %v465_v36 = vpop.f32.mrf.mxu0  ;;  %v473_v37 = vpop.f32.mrf.mxu1 }
  0xe5   :  { %427 = vst [vmem:[#allocation2 + $0x8] sm:$0xff] %v400_v32   ;;  %431 = vst [vmem:[#allocation2 + $0x28] sm:$0xff] %v420_v33   ;;  %v395_v38 = vpack.c.bf16 %v189_v34, %v186_v28  ;;  %v415_v39 = vpack.c.bf16 %v221_v35, %v218_v29  ;;  %v242_v40 = vadd.f32 %v473_v37, %v339_v19 }
  0xe6   :  { %v201_v41 = vpop.f32.mrf.mxu0  ;;  %v233_v42 = vpop.f32.mrf.mxu1  ;;  %v210_v46 = vadd.f32 %v465_v36, %v339_v19 }
  0xe7   :  { %396 = vst [vmem:[#allocation2] sm:$0xff] %v395_v38   ;;  %430 = vst [vmem:[#allocation2 + $0x20] sm:$0xff] %v415_v39   ;;  %v391_v43 = vpack.c.bf16 %v242_v40, %v242_v40  ;;  %v202_v48 = vadd.f32 %v339_v19, %v201_v41  ;;  %v234_v51 = vadd.f32 %v339_v19, %v233_v42 }
  0xe8   :  { %v466_v44 = vpop.f32.mrf.mxu0  ;;  %v474_v45 = vpop.f32.mrf.mxu1 }
  0xe9   :  { %322 = vst [vmem:[#allocation2 + $0x38] sm:$0xf] %v391_v43  ;;  %v213_v47 = vadd.f32 %v466_v44, %v339_v19 }
  0xea   :  { %v204_v49 = vpop.f32.mrf.mxu0  ;;  %v236_v50 = vpop.f32.mrf.mxu1 }
  0xeb   :  { %v410_v52 = vpack.c.bf16 %v213_v47, %v210_v46  ;;  %v205_v53 = vadd.f32 %v339_v19, %v204_v49  ;;  %v237_v54 = vadd.f32 %v339_v19, %v236_v50 }
  0xed   :  { %429 = vst [vmem:[#allocation2 + $0x18] sm:$0xff] %v410_v52   ;;  %v405_v55 = vpack.c.bf16 %v205_v53, %v202_v48  ;;  %v425_v56 = vpack.c.bf16 %v237_v54, %v234_v51 }
  0xef   :  { %428 = vst [vmem:[#allocation2 + $0x10] sm:$0xff] %v405_v55   ;;  %432 = vst [vmem:[#allocation2 + $0x30] sm:$0xff] %v425_v56  }
  0xf0   :  { %516 = shalt.err (!%p513_p4)
}
  0xf1   :  { %s529_s15 = smov 64   ;;  %s530_s16 = smov 4  }
  0xf2   :  { %334 = dma.vmem_to_hbm [thread:$0]  %s329_s2, 960, %s610_s3, [#allocation3], %s529_s15, %s529_s15, %s530_s16  }
  0xf3   :  { %525 = dma.done.wait [#allocation3], 960  }
  0xf4   :  { %526 = vsyncadd [#allocation3], 4294966336 }
  0xf5   :  { %338 = vsyncpa [#allocation3], 1 }

</bundles_post_ra>
